<compile_context>
chip_gen: v5e
topology: v5e:2x2
jax: 0.10.0
libtpu: 0.0.40
codegen_flags: <defaults>
</compile_context>

<pallas_src>
import math
import functools

import jax
import jax.numpy as jnp
from jax.experimental import pallas as pl
from jax.experimental.pallas import tpu as pltpu


def _layer_norm(x, gamma, beta, eps=1e-5):
    mean = jnp.mean(x, axis=-1, keepdims=True)
    var = jnp.mean((x - mean) ** 2, axis=-1, keepdims=True)
    return (x - mean) * jax.lax.rsqrt(var + eps) * gamma + beta


def encoder_layer_kernel(num_heads, num_f_chunks, approx_recip,
                         x_ref,
                         wqkv_ref, bqkv_ref, wo_ref, bo_ref,
                         ln0g_ref, ln0b_ref,
                         w1_ref, b1_ref, w2_ref, b2_ref,
                         ln1g_ref, ln1b_ref,
                         out_ref,
                         acc_ref, y_ref):
    t = pl.program_id(1)
    H = num_heads
    bb, S, D = x_ref.shape
    cdt = wqkv_ref.dtype                      # MXU operand dtype (bf16 or f32)

    @pl.when(t == 0)
    def _init():
        acc_ref[...] = jnp.zeros_like(acc_ref)

    # ---------- Phase 1: one attention head per grid step (t in [0, H)) ----------
    @pl.when(t < H)
    def _head():
        x2 = x_ref[...].astype(cdt).reshape(bb * S, D)
        # Fused per-head QKV projection: (bb*S, D) @ (D, 3*hd); Q scale pre-folded.
        qkv = jnp.dot(x2, wqkv_ref[0],
                      preferred_element_type=jnp.float32) + bqkv_ref[0]
        hd = qkv.shape[-1] // 3
        qkv = qkv.reshape(bb, S, 3 * hd)
        q = qkv[..., 0 * hd:1 * hd].astype(cdt)
        k = qkv[..., 1 * hd:2 * hd].astype(cdt)
        v = qkv[..., 2 * hd:3 * hd].astype(cdt)

        s = jnp.einsum('bqd,bkd->bqk', q, k,
                       preferred_element_type=jnp.float32)            # (bb,S,S) f32
        s = s - jnp.max(s, axis=-1, keepdims=True)
        p = jnp.exp(s)
        denom = jnp.sum(p, axis=-1, keepdims=True)
        if approx_recip:
            p = p * pl.reciprocal(denom, approx=True)                 # EUP slot
        else:
            p = p / denom                                             # exact f32 path
        o = jnp.einsum('bqk,bkd->bqd', p.astype(cdt), v,
                       preferred_element_type=jnp.float32)            # (bb,S,hd) f32

        # Accumulated per-head output projection: acc += o_h @ Wo[h]
        o2 = o.astype(cdt).reshape(bb * S, hd)
        acc_ref[...] += jnp.dot(o2, wo_ref[0],
                                preferred_element_type=jnp.float32)

    # ---------- Attention tail: residual + LayerNorm0 ----------
    @pl.when(t == H - 1)
    def _ln0():
        # TODO(synk): dropout (p=dropout / atten_drop) omitted — eval semantics.
        x32 = x_ref[...].astype(jnp.float32).reshape(bb * S, D)
        y = _layer_norm(x32 + acc_ref[...] + bo_ref[...],
                        ln0g_ref[...], ln0b_ref[...])
        y_ref[...] = y
        acc_ref[...] = jnp.zeros_like(acc_ref)     # reuse accumulator for the FFN

    # ---------- Phase 2: FFN, one F-chunk per grid step (t in [H, H+NF)) ----------
    @pl.when(t >= H)
    def _ffn():
        y = y_ref[...].astype(cdt)
        h1 = jnp.dot(y, w1_ref[0], preferred_element_type=jnp.float32) + b1_ref[0]
        h1 = jnp.maximum(h1, 0.0).astype(cdt)                          # (bb*S, FC)
        acc_ref[...] += jnp.dot(h1, w2_ref[0],
                                preferred_element_type=jnp.float32)

    # ---------- Finalize: fc2 bias, residual, LayerNorm1, write out ----------
    @pl.when(t == H + num_f_chunks - 1)
    def _final():
        out = _layer_norm(y_ref[...] + acc_ref[...] + b2_ref[...],
                          ln1g_ref[...], ln1b_ref[...])
        out_ref[...] = out.reshape(bb, S, D).astype(out_ref.dtype)


_PARAM_ORDER = ["wqkv_h", "bqkv_h", "wo_h", "bo", "ln0g", "ln0b",
                "w1_c", "b1_c", "w2_c", "b2", "ln1g", "ln1b"]


def _fuse_params(params, num_heads, num_f_chunks, compute_dtype):
    """Offline fusion: (q/k/v_tran ∘ MHA in_proj) folded into per-head (D, 3*hd) slabs
    with the 1/sqrt(hd) Q scale; out_proj split per head; FFN weights split into
    F-chunks.  Matmul weights cast to compute_dtype; biases / LN params stay f32."""
    D = params["wq"].shape[0]
    H = num_heads
    hd = D // H
    F = params["w1"].shape[1]
    fc = F // num_f_chunks
    scale = 1.0 / math.sqrt(hd)

    wq = (params["wq"] @ params["wiq"]) * scale
    bq = (params["bq"] @ params["wiq"] + params["biq"]) * scale
    wk = params["wk"] @ params["wik"]
    bk = params["bk"] @ params["wik"] + params["bik"]
    wv = params["wv"] @ params["wiv"]
    bv = params["bv"] @ params["wiv"] + params["biv"]

    def heads_w(w):   # (D, D) -> (H, D, hd)
        return w.reshape(D, H, hd).transpose(1, 0, 2)

    def heads_b(b):   # (1, D) -> (H, 1, hd)
        return b.reshape(1, H, hd).transpose(1, 0, 2)

    wqkv_h = jnp.concatenate([heads_w(wq), heads_w(wk), heads_w(wv)], axis=-1)
    bqkv_h = jnp.concatenate([heads_b(bq), heads_b(bk), heads_b(bv)], axis=-1)

    w1_c = params["w1"].reshape(D, num_f_chunks, fc).transpose(1, 0, 2)
    b1_c = params["b1"].reshape(1, num_f_chunks, fc).transpose(1, 0, 2)
    w2_c = params["w2"].reshape(num_f_chunks, fc, D)

    return {
        "wqkv_h": wqkv_h.astype(compute_dtype),                          # (H, D, 3hd)
        "bqkv_h": bqkv_h.astype(jnp.float32),                            # (H, 1, 3hd)
        "wo_h": params["wo"].reshape(H, hd, D).astype(compute_dtype),    # (H, hd, D)
        "bo": params["bo"].astype(jnp.float32),
        "ln0g": params["ln0g"].astype(jnp.float32),
        "ln0b": params["ln0b"].astype(jnp.float32),
        "w1_c": w1_c.astype(compute_dtype),                              # (NF, D, fc)
        "b1_c": b1_c.astype(jnp.float32),                                # (NF, 1, fc)
        "w2_c": w2_c.astype(compute_dtype),                              # (NF, fc, D)
        "b2": params["b2"].astype(jnp.float32),
        "ln1g": params["ln1g"].astype(jnp.float32),
        "ln1b": params["ln1b"].astype(jnp.float32),
    }


def _vmem_limit_bytes():
    # Per-generation limit: ~75% of per-core VMEM (48 MiB on v7x, 96 MiB on v5e/v6e).
    try:
        cap = int(pltpu.get_tpu_info().vmem_capacity_bytes)
    except Exception:
        cap = 128 * 1024 * 1024
    return int(min(cap * 3 // 4, 100 * 1024 * 1024))


def _pick_batch_block(B, S, max_rows=512):
    """Largest batch block with bounded rows, keeping >=2 blocks on the parallel
    axis when possible (feeds both v7x TensorCores)."""
    min_blocks = 2 if B >= 2 else 1
    best = 1
    for cand in range(1, B + 1):
        if B % cand == 0 and cand * S <= max_rows and B // cand >= min_blocks:
            best = cand
    return best


def _maybe_single_buffered(block_shape, index_map):
    # Constant-index params don't need double buffering.
    try:
        return pl.BlockSpec(block_shape, index_map, pipeline_mode=pl.Buffered(1))
    except Exception:
        return pl.BlockSpec(block_shape, index_map)


def transformer_encoder_layer(x, params, num_heads, *,
                              compute_dtype=jnp.bfloat16,
                              ffn_chunk=512, max_rows_per_block=512):
    B, S, D = x.shape
    assert D % num_heads == 0
    H = num_heads
    hd = D // H
    F = params["w1"].shape[1]
    out_dtype = x.dtype

    nf = F // ffn_chunk if (F % ffn_chunk == 0 and ffn_chunk < F) else 1
    fc = F // nf
    bb = _pick_batch_block(B, S, max_rows_per_block)
    nb = B // bb
    T = H + nf

    fused = _fuse_params(params, H, nf, compute_dtype)
    x_in = x.astype(compute_dtype) if jnp.dtype(compute_dtype) != x.dtype else x
    args = [x_in] + [fused[n] for n in _PARAM_ORDER]

    head_idx = lambda b, t: (jnp.minimum(t, H - 1), 0, 0)   # streamed per head
    ffn_idx = lambda b, t: (jnp.maximum(t - H, 0), 0, 0)    # streamed per F-chunk
    const2 = lambda b, t: (0, 0)

    in_specs = [
        pl.BlockSpec((bb, S, D), lambda b, t: (b, 0, 0)),    # x
        pl.BlockSpec((1, D, 3 * hd), head_idx),              # wqkv_h
        pl.BlockSpec((1, 1, 3 * hd), head_idx),              # bqkv_h
        pl.BlockSpec((1, hd, D), head_idx),                  # wo_h
        _maybe_single_buffered((1, D), const2),              # bo
        _maybe_single_buffered((1, D), const2),              # ln0g
        _maybe_single_buffered((1, D), const2),              # ln0b
        pl.BlockSpec((1, D, fc), ffn_idx),                   # w1_c
        pl.BlockSpec((1, 1, fc), ffn_idx),                   # b1_c
        pl.BlockSpec((1, fc, D), ffn_idx),                   # w2_c
        _maybe_single_buffered((1, D), const2),              # b2
        _maybe_single_buffered((1, D), const2),              # ln1g
        _maybe_single_buffered((1, D), const2),              # ln1b
    ]
    out_specs = pl.BlockSpec((bb, S, D), lambda b, t: (b, 0, 0))

    approx = bool(jnp.dtype(compute_dtype) != jnp.dtype(jnp.float32))
    kernel = functools.partial(encoder_layer_kernel, H, nf, approx)

    return pl.pallas_call(
        kernel,
        out_shape=jax.ShapeDtypeStruct((B, S, D), out_dtype),
        grid=(nb, T),
        in_specs=in_specs,
        out_specs=out_specs,
        scratch_shapes=[pltpu.VMEM((bb * S, D), jnp.float32),   # attn / ffn accumulator
                        pltpu.VMEM((bb * S, D), jnp.float32)],  # post-LN0 activations
        compiler_params=pltpu.CompilerParams(
            dimension_semantics=("parallel", "arbitrary"),
            vmem_limit_bytes=_vmem_limit_bytes()),
    )(*args)


def make_params(key, embed_dim, mlp_ratio):
    """Deterministic synthetic parameters. Weights stored (in, out); biases / LN (1, dim)."""
    D = embed_dim
    F = int(embed_dim * mlp_ratio)
    keys = jax.random.split(key, 18)

    def lin(kw, kb, fan_in, fan_out):
        bound = 1.0 / math.sqrt(fan_in)
        w = jax.random.uniform(kw, (fan_in, fan_out), jnp.float32, -bound, bound)
        b = jax.random.uniform(kb, (1, fan_out), jnp.float32, -bound, bound)
        return w, b

    p = {}
    p["wq"], p["bq"] = lin(keys[0], keys[1], D, D)
    p["wk"], p["bk"] = lin(keys[2], keys[3], D, D)
    p["wv"], p["bv"] = lin(keys[4], keys[5], D, D)
    p["wiq"], p["biq"] = lin(keys[6], keys[7], D, D)
    p["wik"], p["bik"] = lin(keys[8], keys[9], D, D)
    p["wiv"], p["biv"] = lin(keys[10], keys[11], D, D)
    p["wo"], p["bo"] = lin(keys[12], keys[13], D, D)
    p["w1"], p["b1"] = lin(keys[14], keys[15], D, F)
    p["w2"], p["b2"] = lin(keys[16], keys[17], F, D)
    p["ln0g"] = jnp.ones((1, D), jnp.float32)
    p["ln0b"] = jnp.zeros((1, D), jnp.float32)
    p["ln1g"] = jnp.ones((1, D), jnp.float32)
    p["ln1b"] = jnp.zeros((1, D), jnp.float32)
    return p


def reference(x, params, num_heads):
    """Pure-JAX reference mirroring the PyTorch forward (eval mode, no masks), UNFUSED."""
    B, S, D = x.shape
    hd = D // num_heads

    def ln(z, g, b, eps=1e-5):
        m = z.mean(-1, keepdims=True)
        v = ((z - m) ** 2).mean(-1, keepdims=True)
        return (z - m) / jnp.sqrt(v + eps) * g + b

    q_in = x @ params["wq"] + params["bq"]
    k_in = x @ params["wk"] + params["bk"]
    v_in = x @ params["wv"] + params["bv"]
    q = q_in @ params["wiq"] + params["biq"]
    k = k_in @ params["wik"] + params["bik"]
    v = v_in @ params["wiv"] + params["biv"]
    q = q.reshape(B, S, num_heads, hd).transpose(0, 2, 1, 3) * (1.0 / math.sqrt(hd))
    k = k.reshape(B, S, num_heads, hd).transpose(0, 2, 1, 3)
    v = v.reshape(B, S, num_heads, hd).transpose(0, 2, 1, 3)
    s = q @ jnp.swapaxes(k, -1, -2)
    p = jax.nn.softmax(s, axis=-1)
    o = (p @ v).transpose(0, 2, 1, 3).reshape(B, S, D)
    o = o @ params["wo"] + params["bo"]
    y = ln(x + o, params["ln0g"], params["ln0b"])
    h = jnp.maximum(y @ params["w1"] + params["b1"], 0.0)
    h = h @ params["w2"] + params["b2"]
    return ln(y + h, params["ln1g"], params["ln1b"])


if __name__ == "__main__":
    B, S, D = 2, 8, 32
    num_heads, mlp_ratio = 4, 4.0

    key = jax.random.PRNGKey(0)
    kx, kp = jax.random.split(key)
    x = jax.random.normal(kx, (B, S, D), jnp.float32)
    params = make_params(kp, D, mlp_ratio)

    ref = reference(x, params, num_heads)

    # f32 compute path — exact softmax division, tight correctness check.
    out = transformer_encoder_layer(x, params, num_heads, compute_dtype=jnp.float32)
    out = jax.block_until_ready(out)
    assert out.shape == (B, S, D)
    assert jnp.allclose(out, ref, atol=5e-3, rtol=5e-3), float(jnp.max(jnp.abs(out - ref)))

    # bf16 fast path (bf16 MXU operands, f32 accumulation) — loose check vs f32 reference.
    out_bf = transformer_encoder_layer(x, params, num_heads, compute_dtype=jnp.bfloat16)
    out_bf = jax.block_until_ready(out_bf).astype(jnp.float32)
    assert jnp.allclose(out_bf, ref, atol=1e-1, rtol=1e-1), float(jnp.max(jnp.abs(out_bf - ref)))

    print("KERNEL_OK")
</pallas_src>

<mosaic_0001>
module attributes {stable_mosaic.version = 11 : i64} {
  func.func @encoder_layer_kernel(%arg0: i32, %arg1: i32, %arg2: memref<1x8x32xf32, #tpu.memory_space<vmem>>, %arg3: memref<1x32x24xf32, #tpu.memory_space<vmem>>, %arg4: memref<1x1x24xf32, #tpu.memory_space<vmem>>, %arg5: memref<1x8x32xf32, #tpu.memory_space<vmem>>, %arg6: memref<1x32xf32, #tpu.memory_space<vmem>>, %arg7: memref<1x32xf32, #tpu.memory_space<vmem>>, %arg8: memref<1x32xf32, #tpu.memory_space<vmem>>, %arg9: memref<1x32x128xf32, #tpu.memory_space<vmem>>, %arg10: memref<1x1x128xf32, #tpu.memory_space<vmem>>, %arg11: memref<1x128x32xf32, #tpu.memory_space<vmem>>, %arg12: memref<1x32xf32, #tpu.memory_space<vmem>>, %arg13: memref<1x32xf32, #tpu.memory_space<vmem>>, %arg14: memref<1x32xf32, #tpu.memory_space<vmem>>, %arg15: memref<1x8x32xf32, #tpu.memory_space<vmem>>, %arg16: memref<8x32xf32, #tpu.memory_space<vmem>>, %arg17: memref<8x32xf32, #tpu.memory_space<vmem>>) attributes {dimension_semantics = [#tpu.dimension_semantics<parallel>, #tpu.dimension_semantics<arbitrary>], iteration_bounds = array<i64: 2, 5>, scalar_prefetch = 0 : i64, scratch_operands = 2 : i64, tpu.core_type = #tpu.core_type<tc>, window_params = [{transform_indices = @transform_0, window_bounds = array<i64: 1, 8, 32>}, {transform_indices = @transform_1, window_bounds = array<i64: 1, 32, 24>}, {transform_indices = @transform_2, window_bounds = array<i64: 1, 1, 24>}, {transform_indices = @transform_3, window_bounds = array<i64: 1, 8, 32>}, {pipeline_mode = #tpu.pipeline_mode<synchronous>, transform_indices = @transform_4, window_bounds = array<i64: 1, 32>}, {pipeline_mode = #tpu.pipeline_mode<synchronous>, transform_indices = @transform_5, window_bounds = array<i64: 1, 32>}, {pipeline_mode = #tpu.pipeline_mode<synchronous>, transform_indices = @transform_6, window_bounds = array<i64: 1, 32>}, {transform_indices = @transform_7, window_bounds = array<i64: 1, 32, 128>}, {transform_indices = @transform_8, window_bounds = array<i64: 1, 1, 128>}, {transform_indices = @transform_9, window_bounds = array<i64: 1, 128, 32>}, {pipeline_mode = #tpu.pipeline_mode<synchronous>, transform_indices = @transform_10, window_bounds = array<i64: 1, 32>}, {pipeline_mode = #tpu.pipeline_mode<synchronous>, transform_indices = @transform_11, window_bounds = array<i64: 1, 32>}, {pipeline_mode = #tpu.pipeline_mode<synchronous>, transform_indices = @transform_12, window_bounds = array<i64: 1, 32>}, {transform_indices = @transform_13, window_bounds = array<i64: 1, 8, 32>}]} {
    %c0_i32 = arith.constant 0 : i32
    %0 = arith.cmpi eq, %arg1, %c0_i32 : i32
    %1 = arith.extui %0 : i1 to i32
    %c0_i32_0 = arith.constant 0 : i32
    %2 = arith.cmpi ne, %1, %c0_i32_0 : i32
    scf.if %2 {
      %cst = arith.constant 0.000000e+00 : f32
      %15 = vector.broadcast %cst : f32 to vector<8x32xf32>
      %c0 = arith.constant 0 : index
      %c0_7 = arith.constant 0 : index
      %16 = vector.load %arg16[%c0, %c0_7] : memref<8x32xf32, #tpu.memory_space<vmem>>, vector<8x32xf32>
      tpu.vector_store %arg16[%c0, %c0_7], %15 {strides = array<i32>} : memref<8x32xf32, #tpu.memory_space<vmem>>, vector<8x32xf32>,
    } else {
    }
    %c4_i32 = arith.constant 4 : i32
    %3 = arith.cmpi slt, %arg1, %c4_i32 : i32
    %4 = arith.extui %3 : i1 to i32
    %c0_i32_1 = arith.constant 0 : i32
    %5 = arith.cmpi ne, %4, %c0_i32_1 : i32
    scf.if %5 {
      %c0 = arith.constant 0 : index
      %c0_7 = arith.constant 0 : index
      %c0_8 = arith.constant 0 : index
      %15 = vector.load %arg2[%c0, %c0_7, %c0_8] : memref<1x8x32xf32, #tpu.memory_space<vmem>>, vector<1x8x32xf32>
      %16 = vector.shape_cast %15 : vector<1x8x32xf32> to vector<8x32xf32>
      %c0_9 = arith.constant 0 : index
      %c0_10 = arith.constant 0 : index
      %c0_11 = arith.constant 0 : index
      %17 = vector.load %arg3[%c0_9, %c0_10, %c0_11] : memref<1x32x24xf32, #tpu.memory_space<vmem>>, vector<1x32x24xf32>
      %18 = vector.shape_cast %17 : vector<1x32x24xf32> to vector<32x24xf32>
      %cst = arith.constant dense<0.000000e+00> : vector<8x24xf32>
      %19 = tpu.matmul %16, %18, %cst {dimension_numbers = #tpu.dot_dimension_numbers<[1], [0], [0], [1], [0, 0, 1, 1], [], []>} : vector<8x32xf32>, vector<32x24xf32>, vector<8x24xf32> -> vector<8x24xf32>
      %c0_12 = arith.constant 0 : index
      %c0_13 = arith.constant 0 : index
      %c0_14 = arith.constant 0 : index
      %20 = vector.load %arg4[%c0_12, %c0_13, %c0_14] : memref<1x1x24xf32, #tpu.memory_space<vmem>>, vector<1x1x24xf32>
      %21 = vector.shape_cast %20 : vector<1x1x24xf32> to vector<1x24xf32>
      %22 = vector.broadcast %21 : vector<1x24xf32> to vector<8x24xf32>
      %23 = arith.addf %19, %22 : vector<8x24xf32>
      %24 = vector.shape_cast %23 : vector<8x24xf32> to vector<1x8x24xf32>
      %25 = vector.extract_strided_slice %24 {offsets = [0, 0, 0], sizes = [1, 8, 8], strides = [1, 1, 1]} : vector<1x8x24xf32> to vector<1x8x8xf32>
      %26 = vector.extract_strided_slice %24 {offsets = [0, 0, 8], sizes = [1, 8, 8], strides = [1, 1, 1]} : vector<1x8x24xf32> to vector<1x8x8xf32>
      %27 = vector.extract_strided_slice %24 {offsets = [0, 0, 16], sizes = [1, 8, 8], strides = [1, 1, 1]} : vector<1x8x24xf32> to vector<1x8x8xf32>
      "tpu.trace_start"() <{level = 10 : i32, message = "bqd,bkd->bqk"}> : () -> ()
      %cst_15 = arith.constant dense<0.000000e+00> : vector<1x8x8xf32>
      %28 = tpu.matmul %25, %26, %cst_15 {dimension_numbers = #tpu.dot_dimension_numbers<[2], [2], [1], [1], [0, 0, 0, 1, 1, 1], [0], [0]>} : vector<1x8x8xf32>, vector<1x8x8xf32>, vector<1x8x8xf32> -> vector<1x8x8xf32>
      "tpu.trace_stop"() : () -> ()
      %cst_16 = arith.constant dense<0xFF800000> : vector<1x8xf32>
      %29 = vector.multi_reduction <maximumf>, %28, %cst_16 [2] : vector<1x8x8xf32> to vector<1x8xf32>
      %30 = vector.shape_cast %29 : vector<1x8xf32> to vector<1x8x1xf32>
      %31 = vector.broadcast %30 : vector<1x8x1xf32> to vector<1x8x8xf32>
      %32 = arith.subf %28, %31 : vector<1x8x8xf32>
      %33 = math.exp %32 : vector<1x8x8xf32>
      %cst_17 = arith.constant dense<0.000000e+00> : vector<1x8xf32>
      %34 = vector.multi_reduction <add>, %33, %cst_17 [2] : vector<1x8x8xf32> to vector<1x8xf32>
      %35 = vector.shape_cast %34 : vector<1x8xf32> to vector<1x8x1xf32>
      %36 = vector.broadcast %35 : vector<1x8x1xf32> to vector<1x8x8xf32>
      %37 = arith.divf %33, %36 : vector<1x8x8xf32>
      "tpu.trace_start"() <{level = 10 : i32, message = "bqk,bkd->bqd"}> : () -> ()
      %cst_18 = arith.constant dense<0.000000e+00> : vector<1x8x8xf32>
      %38 = tpu.matmul %37, %27, %cst_18 {dimension_numbers = #tpu.dot_dimension_numbers<[2], [1], [1], [2], [0, 0, 0, 1, 1, 2], [0], [0]>} : vector<1x8x8xf32>, vector<1x8x8xf32>, vector<1x8x8xf32> -> vector<1x8x8xf32>
      "tpu.trace_stop"() : () -> ()
      %39 = vector.shape_cast %38 : vector<1x8x8xf32> to vector<8x8xf32>
      %c0_19 = arith.constant 0 : index
      %c0_20 = arith.constant 0 : index
      %40 = vector.load %arg16[%c0_19, %c0_20] : memref<8x32xf32, #tpu.memory_space<vmem>>, vector<8x32xf32>
      %c0_21 = arith.constant 0 : index
      %c0_22 = arith.constant 0 : index
      %c0_23 = arith.constant 0 : index
      %41 = vector.load %arg5[%c0_21, %c0_22, %c0_23] : memref<1x8x32xf32, #tpu.memory_space<vmem>>, vector<1x8x32xf32>
      %42 = vector.shape_cast %41 : vector<1x8x32xf32> to vector<8x32xf32>
      %cst_24 = arith.constant dense<0.000000e+00> : vector<8x32xf32>
      %43 = tpu.matmul %39, %42, %cst_24 {dimension_numbers = #tpu.dot_dimension_numbers<[1], [0], [0], [1], [0, 0, 1, 1], [], []>} : vector<8x8xf32>, vector<8x32xf32>, vector<8x32xf32> -> vector<8x32xf32>
      %44 = arith.addf %40, %43 : vector<8x32xf32>
      %c0_25 = arith.constant 0 : index
      %c0_26 = arith.constant 0 : index
      %45 = vector.load %arg16[%c0_25, %c0_26] : memref<8x32xf32, #tpu.memory_space<vmem>>, vector<8x32xf32>
      tpu.vector_store %arg16[%c0_25, %c0_26], %44 {strides = array<i32>} : memref<8x32xf32, #tpu.memory_space<vmem>>, vector<8x32xf32>,
    } else {
    }
    %c3_i32 = arith.constant 3 : i32
    %6 = arith.cmpi eq, %arg1, %c3_i32 : i32
    %7 = arith.extui %6 : i1 to i32
    %c0_i32_2 = arith.constant 0 : i32
    %8 = arith.cmpi ne, %7, %c0_i32_2 : i32
    scf.if %8 {
      %c0 = arith.constant 0 : index
      %c0_7 = arith.constant 0 : index
      %c0_8 = arith.constant 0 : index
      %15 = vector.load %arg2[%c0, %c0_7, %c0_8] : memref<1x8x32xf32, #tpu.memory_space<vmem>>, vector<1x8x32xf32>
      %16 = vector.shape_cast %15 : vector<1x8x32xf32> to vector<8x32xf32>
      %c0_9 = arith.constant 0 : index
      %c0_10 = arith.constant 0 : index
      %17 = vector.load %arg16[%c0_9, %c0_10] : memref<8x32xf32, #tpu.memory_space<vmem>>, vector<8x32xf32>
      %18 = arith.addf %16, %17 : vector<8x32xf32>
      %c0_11 = arith.constant 0 : index
      %c0_12 = arith.constant 0 : index
      %19 = vector.load %arg6[%c0_11, %c0_12] : memref<1x32xf32, #tpu.memory_space<vmem>>, vector<1x32xf32>
      %20 = vector.broadcast %19 : vector<1x32xf32> to vector<8x32xf32>
      %21 = arith.addf %18, %20 : vector<8x32xf32>
      %c0_13 = arith.constant 0 : index
      %c0_14 = arith.constant 0 : index
      %22 = vector.load %arg7[%c0_13, %c0_14] : memref<1x32xf32, #tpu.memory_space<vmem>>, vector<1x32xf32>
      %c0_15 = arith.constant 0 : index
      %c0_16 = arith.constant 0 : index
      %23 = vector.load %arg8[%c0_15, %c0_16] : memref<1x32xf32, #tpu.memory_space<vmem>>, vector<1x32xf32>
      %cst = arith.constant dense<0.000000e+00> : vector<8xf32>
      %24 = vector.multi_reduction <add>, %21, %cst [1] : vector<8x32xf32> to vector<8xf32>
      %25 = vector.shape_cast %24 : vector<8xf32> to vector<8x1xf32>
      %cst_17 = arith.constant 3.200000e+01 : f32
      %26 = vector.broadcast %cst_17 : f32 to vector<8x1xf32>
      %27 = arith.divf %25, %26 : vector<8x1xf32>
      %28 = vector.broadcast %27 : vector<8x1xf32> to vector<8x32xf32>
      %29 = arith.subf %21, %28 : vector<8x32xf32>
      %30 = arith.mulf %29, %29 : vector<8x32xf32>
      %cst_18 = arith.constant dense<0.000000e+00> : vector<8xf32>
      %31 = vector.multi_reduction <add>, %30, %cst_18 [1] : vector<8x32xf32> to vector<8xf32>
      %32 = vector.shape_cast %31 : vector<8xf32> to vector<8x1xf32>
      %cst_19 = arith.constant 3.200000e+01 : f32
      %33 = vector.broadcast %cst_19 : f32 to vector<8x1xf32>
      %34 = arith.divf %32, %33 : vector<8x1xf32>
      %35 = vector.broadcast %27 : vector<8x1xf32> to vector<8x32xf32>
      %36 = arith.subf %21, %35 : vector<8x32xf32>
      %cst_20 = arith.constant 9.99999974E-6 : f32
      %37 = vector.broadcast %cst_20 : f32 to vector<8x1xf32>
      %38 = arith.addf %34, %37 : vector<8x1xf32>
      %39 = math.rsqrt %38 : vector<8x1xf32>
      %40 = vector.broadcast %39 : vector<8x1xf32> to vector<8x32xf32>
      %41 = arith.mulf %36, %40 : vector<8x32xf32>
      %42 = vector.broadcast %22 : vector<1x32xf32> to vector<8x32xf32>
      %43 = arith.mulf %41, %42 : vector<8x32xf32>
      %44 = vector.broadcast %23 : vector<1x32xf32> to vector<8x32xf32>
      %45 = arith.addf %43, %44 : vector<8x32xf32>
      %c0_21 = arith.constant 0 : index
      %c0_22 = arith.constant 0 : index
      %46 = vector.load %arg17[%c0_21, %c0_22] : memref<8x32xf32, #tpu.memory_space<vmem>>, vector<8x32xf32>
      tpu.vector_store %arg17[%c0_21, %c0_22], %45 {strides = array<i32>} : memref<8x32xf32, #tpu.memory_space<vmem>>, vector<8x32xf32>,
      %cst_23 = arith.constant 0.000000e+00 : f32
      %47 = vector.broadcast %cst_23 : f32 to vector<8x32xf32>
      %c0_24 = arith.constant 0 : index
      %c0_25 = arith.constant 0 : index
      %48 = vector.load %arg16[%c0_24, %c0_25] : memref<8x32xf32, #tpu.memory_space<vmem>>, vector<8x32xf32>
      tpu.vector_store %arg16[%c0_24, %c0_25], %47 {strides = array<i32>} : memref<8x32xf32, #tpu.memory_space<vmem>>, vector<8x32xf32>,
    } else {
    }
    %c4_i32_3 = arith.constant 4 : i32
    %9 = arith.cmpi sge, %arg1, %c4_i32_3 : i32
    %10 = arith.extui %9 : i1 to i32
    %c0_i32_4 = arith.constant 0 : i32
    %11 = arith.cmpi ne, %10, %c0_i32_4 : i32
    scf.if %11 {
      %c0 = arith.constant 0 : index
      %c0_7 = arith.constant 0 : index
      %15 = vector.load %arg17[%c0, %c0_7] : memref<8x32xf32, #tpu.memory_space<vmem>>, vector<8x32xf32>
      %c0_8 = arith.constant 0 : index
      %c0_9 = arith.constant 0 : index
      %c0_10 = arith.constant 0 : index
      %16 = vector.load %arg9[%c0_8, %c0_9, %c0_10] : memref<1x32x128xf32, #tpu.memory_space<vmem>>, vector<1x32x128xf32>
      %17 = vector.shape_cast %16 : vector<1x32x128xf32> to vector<32x128xf32>
      %cst = arith.constant dense<0.000000e+00> : vector<8x128xf32>
      %18 = tpu.matmul %15, %17, %cst {dimension_numbers = #tpu.dot_dimension_numbers<[1], [0], [0], [1], [0, 0, 1, 1], [], []>} : vector<8x32xf32>, vector<32x128xf32>, vector<8x128xf32> -> vector<8x128xf32>
      %c0_11 = arith.constant 0 : index
      %c0_12 = arith.constant 0 : index
      %c0_13 = arith.constant 0 : index
      %19 = vector.load %arg10[%c0_11, %c0_12, %c0_13] : memref<1x1x128xf32, #tpu.memory_space<vmem>>, vector<1x1x128xf32>
      %20 = vector.shape_cast %19 : vector<1x1x128xf32> to vector<1x128xf32>
      %21 = vector.broadcast %20 : vector<1x128xf32> to vector<8x128xf32>
      %22 = arith.addf %18, %21 : vector<8x128xf32>
      %cst_14 = arith.constant 0.000000e+00 : f32
      %23 = vector.broadcast %cst_14 : f32 to vector<8x128xf32>
      %24 = arith.maximumf %22, %23 : vector<8x128xf32>
      %c0_15 = arith.constant 0 : index
      %c0_16 = arith.constant 0 : index
      %25 = vector.load %arg16[%c0_15, %c0_16] : memref<8x32xf32, #tpu.memory_space<vmem>>, vector<8x32xf32>
      %c0_17 = arith.constant 0 : index
      %c0_18 = arith.constant 0 : index
      %c0_19 = arith.constant 0 : index
      %26 = vector.load %arg11[%c0_17, %c0_18, %c0_19] : memref<1x128x32xf32, #tpu.memory_space<vmem>>, vector<1x128x32xf32>
      %27 = vector.shape_cast %26 : vector<1x128x32xf32> to vector<128x32xf32>
      %cst_20 = arith.constant dense<0.000000e+00> : vector<8x32xf32>
      %28 = tpu.matmul %24, %27, %cst_20 {dimension_numbers = #tpu.dot_dimension_numbers<[1], [0], [0], [1], [0, 0, 1, 1], [], []>} : vector<8x128xf32>, vector<128x32xf32>, vector<8x32xf32> -> vector<8x32xf32>
      %29 = arith.addf %25, %28 : vector<8x32xf32>
      %c0_21 = arith.constant 0 : index
      %c0_22 = arith.constant 0 : index
      %30 = vector.load %arg16[%c0_21, %c0_22] : memref<8x32xf32, #tpu.memory_space<vmem>>, vector<8x32xf32>
      tpu.vector_store %arg16[%c0_21, %c0_22], %29 {strides = array<i32>} : memref<8x32xf32, #tpu.memory_space<vmem>>, vector<8x32xf32>,
    } else {
    }
    %c4_i32_5 = arith.constant 4 : i32
    %12 = arith.cmpi eq, %arg1, %c4_i32_5 : i32
    %13 = arith.extui %12 : i1 to i32
    %c0_i32_6 = arith.constant 0 : i32
    %14 = arith.cmpi ne, %13, %c0_i32_6 : i32
    scf.if %14 {
      %c0 = arith.constant 0 : index
      %c0_7 = arith.constant 0 : index
      %15 = vector.load %arg17[%c0, %c0_7] : memref<8x32xf32, #tpu.memory_space<vmem>>, vector<8x32xf32>
      %c0_8 = arith.constant 0 : index
      %c0_9 = arith.constant 0 : index
      %16 = vector.load %arg16[%c0_8, %c0_9] : memref<8x32xf32, #tpu.memory_space<vmem>>, vector<8x32xf32>
      %17 = arith.addf %15, %16 : vector<8x32xf32>
      %c0_10 = arith.constant 0 : index
      %c0_11 = arith.constant 0 : index
      %18 = vector.load %arg12[%c0_10, %c0_11] : memref<1x32xf32, #tpu.memory_space<vmem>>, vector<1x32xf32>
      %19 = vector.broadcast %18 : vector<1x32xf32> to vector<8x32xf32>
      %20 = arith.addf %17, %19 : vector<8x32xf32>
      %c0_12 = arith.constant 0 : index
      %c0_13 = arith.constant 0 : index
      %21 = vector.load %arg13[%c0_12, %c0_13] : memref<1x32xf32, #tpu.memory_space<vmem>>, vector<1x32xf32>
      %c0_14 = arith.constant 0 : index
      %c0_15 = arith.constant 0 : index
      %22 = vector.load %arg14[%c0_14, %c0_15] : memref<1x32xf32, #tpu.memory_space<vmem>>, vector<1x32xf32>
      %cst = arith.constant dense<0.000000e+00> : vector<8xf32>
      %23 = vector.multi_reduction <add>, %20, %cst [1] : vector<8x32xf32> to vector<8xf32>
      %24 = vector.shape_cast %23 : vector<8xf32> to vector<8x1xf32>
      %cst_16 = arith.constant 3.200000e+01 : f32
      %25 = vector.broadcast %cst_16 : f32 to vector<8x1xf32>
      %26 = arith.divf %24, %25 : vector<8x1xf32>
      %27 = vector.broadcast %26 : vector<8x1xf32> to vector<8x32xf32>
      %28 = arith.subf %20, %27 : vector<8x32xf32>
      %29 = arith.mulf %28, %28 : vector<8x32xf32>
      %cst_17 = arith.constant dense<0.000000e+00> : vector<8xf32>
      %30 = vector.multi_reduction <add>, %29, %cst_17 [1] : vector<8x32xf32> to vector<8xf32>
      %31 = vector.shape_cast %30 : vector<8xf32> to vector<8x1xf32>
      %cst_18 = arith.constant 3.200000e+01 : f32
      %32 = vector.broadcast %cst_18 : f32 to vector<8x1xf32>
      %33 = arith.divf %31, %32 : vector<8x1xf32>
      %34 = vector.broadcast %26 : vector<8x1xf32> to vector<8x32xf32>
      %35 = arith.subf %20, %34 : vector<8x32xf32>
      %cst_19 = arith.constant 9.99999974E-6 : f32
      %36 = vector.broadcast %cst_19 : f32 to vector<8x1xf32>
      %37 = arith.addf %33, %36 : vector<8x1xf32>
      %38 = math.rsqrt %37 : vector<8x1xf32>
      %39 = vector.broadcast %38 : vector<8x1xf32> to vector<8x32xf32>
      %40 = arith.mulf %35, %39 : vector<8x32xf32>
      %41 = vector.broadcast %21 : vector<1x32xf32> to vector<8x32xf32>
      %42 = arith.mulf %40, %41 : vector<8x32xf32>
      %43 = vector.broadcast %22 : vector<1x32xf32> to vector<8x32xf32>
      %44 = arith.addf %42, %43 : vector<8x32xf32>
      %45 = vector.shape_cast %44 : vector<8x32xf32> to vector<1x8x32xf32>
      %c0_20 = arith.constant 0 : index
      %c0_21 = arith.constant 0 : index
      %c0_22 = arith.constant 0 : index
      %46 = vector.load %arg15[%c0_20, %c0_21, %c0_22] : memref<1x8x32xf32, #tpu.memory_space<vmem>>, vector<1x8x32xf32>
      tpu.vector_store %arg15[%c0_20, %c0_21, %c0_22], %45 {strides = array<i32>} : memref<1x8x32xf32, #tpu.memory_space<vmem>>, vector<1x8x32xf32>,
    } else {
    }
    return
  }
  func.func @transform_0(%arg0: i32, %arg1: i32) -> (i32, i32, i32) {
    %c0_i32 = arith.constant 0 : i32
    %c0_i32_0 = arith.constant 0 : i32
    %c0_i32_1 = arith.constant 0 : i32
    return %arg0, %c0_i32, %c0_i32_0 : i32, i32, i32
  }
  func.func @transform_1(%arg0: i32, %arg1: i32) -> (i32, i32, i32) {
    %c3_i32 = arith.constant 3 : i32
    %0 = arith.minsi %arg1, %c3_i32 : i32
    %c0_i32 = arith.constant 0 : i32
    %c0_i32_0 = arith.constant 0 : i32
    %c0_i32_1 = arith.constant 0 : i32
    return %0, %c0_i32, %c0_i32_0 : i32, i32, i32
  }
  func.func @transform_2(%arg0: i32, %arg1: i32) -> (i32, i32, i32) {
    %c3_i32 = arith.constant 3 : i32
    %0 = arith.minsi %arg1, %c3_i32 : i32
    %c0_i32 = arith.constant 0 : i32
    %c0_i32_0 = arith.constant 0 : i32
    %c0_i32_1 = arith.constant 0 : i32
    return %0, %c0_i32, %c0_i32_0 : i32, i32, i32
  }
  func.func @transform_3(%arg0: i32, %arg1: i32) -> (i32, i32, i32) {
    %c3_i32 = arith.constant 3 : i32
    %0 = arith.minsi %arg1, %c3_i32 : i32
    %c0_i32 = arith.constant 0 : i32
    %c0_i32_0 = arith.constant 0 : i32
    %c0_i32_1 = arith.constant 0 : i32
    return %0, %c0_i32, %c0_i32_0 : i32, i32, i32
  }
  func.func @transform_4(%arg0: i32, %arg1: i32) -> (i32, i32) {
    %c0_i32 = arith.constant 0 : i32
    %c0_i32_0 = arith.constant 0 : i32
    %c0_i32_1 = arith.constant 0 : i32
    return %c0_i32, %c0_i32_0 : i32, i32
  }
  func.func @transform_5(%arg0: i32, %arg1: i32) -> (i32, i32) {
    %c0_i32 = arith.constant 0 : i32
    %c0_i32_0 = arith.constant 0 : i32
    %c0_i32_1 = arith.constant 0 : i32
    return %c0_i32, %c0_i32_0 : i32, i32
  }
  func.func @transform_6(%arg0: i32, %arg1: i32) -> (i32, i32) {
    %c0_i32 = arith.constant 0 : i32
    %c0_i32_0 = arith.constant 0 : i32
    %c0_i32_1 = arith.constant 0 : i32
    return %c0_i32, %c0_i32_0 : i32, i32
  }
  func.func @transform_7(%arg0: i32, %arg1: i32) -> (i32, i32, i32) {
    %c4_i32 = arith.constant 4 : i32
    %0 = arith.subi %arg1, %c4_i32 : i32
    %c0_i32 = arith.constant 0 : i32
    %1 = arith.maxsi %0, %c0_i32 : i32
    %c0_i32_0 = arith.constant 0 : i32
    %c0_i32_1 = arith.constant 0 : i32
    %c0_i32_2 = arith.constant 0 : i32
    return %1, %c0_i32_0, %c0_i32_1 : i32, i32, i32
  }
  func.func @transform_8(%arg0: i32, %arg1: i32) -> (i32, i32, i32) {
    %c4_i32 = arith.constant 4 : i32
    %0 = arith.subi %arg1, %c4_i32 : i32
    %c0_i32 = arith.constant 0 : i32
    %1 = arith.maxsi %0, %c0_i32 : i32
    %c0_i32_0 = arith.constant 0 : i32
    %c0_i32_1 = arith.constant 0 : i32
    %c0_i32_2 = arith.constant 0 : i32
    return %1, %c0_i32_0, %c0_i32_1 : i32, i32, i32
  }
  func.func @transform_9(%arg0: i32, %arg1: i32) -> (i32, i32, i32) {
    %c4_i32 = arith.constant 4 : i32
    %0 = arith.subi %arg1, %c4_i32 : i32
    %c0_i32 = arith.constant 0 : i32
    %1 = arith.maxsi %0, %c0_i32 : i32
    %c0_i32_0 = arith.constant 0 : i32
    %c0_i32_1 = arith.constant 0 : i32
    %c0_i32_2 = arith.constant 0 : i32
    return %1, %c0_i32_0, %c0_i32_1 : i32, i32, i32
  }
  func.func @transform_10(%arg0: i32, %arg1: i32) -> (i32, i32) {
    %c0_i32 = arith.constant 0 : i32
    %c0_i32_0 = arith.constant 0 : i32
    %c0_i32_1 = arith.constant 0 : i32
    return %c0_i32, %c0_i32_0 : i32, i32
  }
  func.func @transform_11(%arg0: i32, %arg1: i32) -> (i32, i32) {
    %c0_i32 = arith.constant 0 : i32
    %c0_i32_0 = arith.constant 0 : i32
    %c0_i32_1 = arith.constant 0 : i32
    return %c0_i32, %c0_i32_0 : i32, i32
  }
  func.func @transform_12(%arg0: i32, %arg1: i32) -> (i32, i32) {
    %c0_i32 = arith.constant 0 : i32
    %c0_i32_0 = arith.constant 0 : i32
    %c0_i32_1 = arith.constant 0 : i32
    return %c0_i32, %c0_i32_0 : i32, i32
  }
  func.func @transform_13(%arg0: i32, %arg1: i32) -> (i32, i32, i32) {
    %c0_i32 = arith.constant 0 : i32
    %c0_i32_0 = arith.constant 0 : i32
    %c0_i32_1 = arith.constant 0 : i32
    return %arg0, %c0_i32, %c0_i32_0 : i32, i32, i32
  }
}

</mosaic_0001>

<bundles_post_ra>
// kernel: tpu_custom_call.1
= control target key start
LH: loop header
LB: loop body
LE: loop exit
PB: predicated region body
PF: predicated region fallthrough
CT: control target
= control target key end

     0   :  { %s1723_s0 = inlined_call_operand.vmem [shape: f32[2,8,32], index: 0, kind: input, shape index: {}]   ;;  %s1724_s1 = inlined_call_operand.vmem [shape: f32[4,32,24], index: 1, kind: input, shape index: {}]   ;;  %s1725_s2 = inlined_call_operand.vmem [shape: f32[4,1,24], index: 2, kind: input, shape index: {}]   ;;  %s1726_s3 = inlined_call_operand.vmem [shape: f32[4,8,32], index: 3, kind: input, shape index: {}]   ;;  %s1727_s4 = inlined_call_operand.vmem [shape: f32[1,32], index: 4, kind: input, shape index: {}]   ;;  %s1728_s5 = inlined_call_operand.vmem [shape: f32[1,32], index: 5, kind: input, shape index: {}]   ;;  %s1729_s6 = inlined_call_operand.vmem [shape: f32[1,32], index: 6, kind: input, shape index: {}]   ;;  %s1730_s7 = inlined_call_operand.vmem [shape: f32[1,32,128], index: 7, kind: input, shape index: {}]   ;;  %s1731_s8 = inlined_call_operand.vmem [shape: f32[1,1,128], index: 8, kind: input, shape index: {}]   ;;  %s1732_s9 = inlined_call_operand.vmem [shape: f32[1,128,32], index: 9, kind: input, shape index: {}]   ;;  %s1733_s10 = inlined_call_operand.vmem [shape: f32[1,32], index: 10, kind: input, shape index: {}]   ;;  %s1734_s11 = inlined_call_operand.vmem [shape: f32[1,32], index: 11, kind: input, shape index: {}]   ;;  %s1735_s12 = inlined_call_operand.vmem [shape: f32[1,32], index: 12, kind: input, shape index: {}]   ;;  %s1736_s13 = inlined_call_operand.hbm [shape: f32[2,8,32], index: 13, kind: output, shape index: {}]  }
   0x1   :  { %1751 = sst [smem:[#allocation19_spill]] %s1735_s12 }
   0x2   :  { %1752 = sst [smem:[#allocation20_spill]] %s1736_s13 }
   0x3   :  { %18 = vsyncpa [#allocation5], 0 }
   0x4   :  { %20 = vsyncpa [#allocation5 + $0x1], 0  ;;  %s1474_s25 = smov 0   ;;  %s1476_s26 = smov 0  }
   0x5   :  { %s1478_s27 = smov 0   ;;  %s1480_s28 = smov 0  }
   0x6   :  { %s1482_s29 = smov 0   ;;  %s1484_s30 = smov 0  }
   0x7   :  { %s1486_s14 = smov 0   ;;  %s1488_s15 = smov 0  }
   0x8 LB: > { %1753 = sst [smem:[#allocation7_spill]] %s1368_s25  ;;  %s1142_s16 = sadd.s32 4294967295, %s1396_s15   ;;  %s1396_s15 = sphi %s1488_s15, %s26_s15   ;;  %s1392_s14 = sphi %s1486_s14, %s1782_s14   ;;  %s1388_s30 = sphi %s1484_s30, %s1781_s30   ;;  %s1384_s29 = sphi %s1482_s29, %s1780_s29   ;;  %s1380_s28 = sphi %s1480_s28, %s1779_s28   ;;  %s1376_s27 = sphi %s1478_s27, %s1778_s27   ;;  %s1372_s26 = sphi %s1476_s26, %s1777_s26   ;;  %s1368_s25 = sphi %s1474_s25, %s1776_s25  }
   0x9   : > { %1754 = sst [smem:[#allocation8_spill]] %s1372_s26  ;;  %s1143_s17 = sadd.s32 4294967294, %s1396_s15  }
   0xa   : > { %1755 = sst [smem:[#allocation9_spill]] %s1376_s27  ;;  %s35_s18 = sadd.s32 1, %s1388_s30 }
   0xb   : > { %1756 = sst [smem:[#allocation10_spill]] %s1384_s29  ;;  %p36_p0 = scmp.ge.s32.totalorder %s35_s18, 5 }
   0xc   : > { %1757 = sst [smem:[#allocation11_spill]] %s1388_s30  ;;  %s38_s19 = sadd.s32 1, %s1392_s14 }
   0xd   : > { %1758 = sst [smem:[#allocation12_spill]] %s1392_s14  ;;  %p393_p1 = scmp.ne.s32.totalorder %s1376_s27, %s1372_s26 }
   0xe   : > { %1759 = sst [smem:[#allocation13_spill]] %s1396_s15  ;;  %p394_p2 = scmp.eq.s32.totalorder %s1142_s16, 9 }
   0xf   : > { %s1784_s18 = smov (%p36_p0, %s35_s18), 0  ;;  %s1786_s19 = smov (!%p36_p0, %s38_s19), %s1392_s14 }
  0x10   : > { %1760 = sst [smem:[#allocation14_spill]] %s1784_s18  ;;  %p1523_p3 = por %p394_p2, %p393_p1 }
  0x11   : > { %p399_p4 = scmp.ne.s32.totalorder %s1372_s26, %s1368_s25  ;;  %p40_p5 = scmp.ge.s32.totalorder %s1786_s19, 2 }
  0x12   : > { %s1761_s20 = scalar_select %p1523_p3, 1, 0 }
  0x13   : > { %p400_p6 = scmp.eq.s32.totalorder %s1143_s17, 9  ;;  %p1152_p7 = scmp.ge.s32.totalorder %s1396_s15, 1 }
  0x14   : > { %1762 = sst [smem:[#allocation15_spill]] %s1761_s20  ;;  %p516_p8 = scmp.lt.s32.totalorder %s1396_s15, 11 }
  0x15   : > { %s1788_s19 = smov (%p40_p5, %s1786_s19), 0  ;;  %p1533_p9 = por %p400_p6, %p399_p4 }
  0x16   : > { %1763 = sst [smem:[#allocation16_spill]] %s1788_s19  ;;  %p517_p10 = pnand %p1152_p7, %p516_p8 }
  0x17   : > { %s1764_s21 = scalar_select %p1533_p9, 1, 0 }
  0x18   : > { %s380_s22 = ssub.s32 %s1392_s14, %s1788_s19  ;;  %s383_s23 = sadd.s32 1, %s1376_s27 }
  0x19   : > { %1765 = sst [smem:[#allocation17_spill]] %s1764_s21  ;;  %p381_p11 = scmp.eq.s32.totalorder %s380_s22, 0 }
  0x1a   : > { %520 = sbr.rel (%p517_p10) target bundleno = 1823 (0x71f), region = 72  ;;  %s1746_s16 = sand.u32 (!%p517_p10), 1, %s1372_s26  }
  0x1b   : > { %s1541_s24 = scalar_select %p381_p11, %s1376_s27, %s383_s23  }
  0x1c   : > { %p599_p12 = scmp.lt.s32.totalorder (!%p517_p10), %s1384_s29, 1  ;;  %s1547_s17 = sshll.u32 (!%p517_p10), %s1746_s16, 3 }
  0x1d   : > { %1766 = sst [smem:[#allocation18_spill]] %s1541_s24  ;;  %p603_p13 = scmp.lt.s32.totalorder (!%p517_p10), %s1380_s28, 3 }
  0x1e   : > { %s598_s12 = scalar_lea.vmem (!%p517_p10), [#allocation4], %s1547_s17  ;;  %p1189_p0 = scmp.ne.s32.totalorder (!%p517_p10), %s1380_s28, 0 }
  0x1f   : > { %s600_s18 = scalar_select %p599_p12, %s1384_s29, 1 }
  0x20   : > { %s604_s19 = scalar_select %p603_p13, %s1380_s28, 3 }
  0x21   : > { %s1154_s14 = sshll.u32 %s600_s18, 3  ;;  %661 = sbr.rel (%p1189_p0) target bundleno = 40 (0x28), region = 76 }
  0x22   : > { %s1555_s30 = scalar_lea.vmem %s1723_s0, %s1154_s14  ;;  %s1790_s19 = smov (!%p603_p13, %s604_s19), 3 }
  0x23   : > { %s1204_s24 = sshll.u32 %s1790_s19, 5  ;;  %s616_s25 = scalar_lea.vmem %s1725_s2, %s1790_s19 }
  0x24   : > { %s609_s16 = scalar_lea.vmem %s1724_s1, %s1204_s24  ;;  %s1166_s20 = sshll.u32 %s1790_s19, 3 }
  0x25   : > { %s1566_s18 = scalar_lea.vmem %s1726_s3, %s1166_s20 }
  0x26   : > { %vm662_vm0 = vcmask 261120   ;;  %v1398_v0 = vmov 0.0  }
  0x27   : > { %663 = vst.msk [vmem:[#allocation2] sm:$0xff] %vm662_vm0, %v1398_v0 }
  0x28 PF: > { %p1190_p1 = scmp.ge.s32.totalorder %s1380_s28, 4 }
  0x29   : > { %s1399_s13 = smov (!%p1190_p1), 120  }
  0x2a   : > { %667 = sbr.rel (%p1190_p1) target bundleno = 964 (0x3c4), region = 80 }
  0x2f   : > { %v672_v1 = vld [vmem:[%s609_s16 + $0x18] sm:$0xff]  ;;  %v671_v2 = vld [vmem:[%s609_s16 + $0x10] sm:$0xff]  ;;  %v670_v3 = vld [vmem:[%s609_s16 + $0x8] sm:$0xff]  ;;  %vm677_vm1 = vcmask 261120   ;;  %vm704_vm2 = vcmask 64512  }
  0x30   : > { %693 = vmatpush.msra.mxu0 %v672_v1  ;;  %v669_v4 = vld [vmem:[%s609_s16] sm:$0xff] }
  0x31   : > { %v668_v5 = vld [vmem:[%s1555_s30] sm:$0xff] }
  0x32   : > { %694 = vmatpush.msra.mxu0 %v671_v2  ;;  %v1282_v6 = vld [vmem:[%s616_s25] ss:$0 sm:$0xff]  ;;  %s1400_s25 = smov 112  }
  0x33   : > { %v780_v30 = vld [vmem:[%s1566_s18] sm:$0xff] }
  0x34   : > { %695 = vmatpush.msra.mxu0 %v670_v3  ;;  %799 = vmatpush.msra.mxu3 %v780_v30  ;;  %v779_v32 = vld [vmem:[#allocation2] sm:$0xff] }
  0x36   : > { %696 = vmatpush.msra.mxu0 %v669_v4 }
  0x37   : > { %1191 = vmatmul.msk.f32.vlgmr.msra.gmra.mxu0 %vm677_vm1, %v668_v5 }
  0xb4   : > { %v698_v7 = vpop.f32.mrf.mxu0 }
  0xb5   : > { %v699_v8 = vadd.f32 %v1282_v6, %v698_v7 }
  0xb7   : > { %702 = vrot.lane.b32.xlu0 %v699_v8, %s1399_s13 }
 0x129   : > { %v703_v9 = vpop.permute.xlu0 %702 }
 0x12a   : > { %1192 = vmatpush.xpose.msk.msra.mxu1 %vm704_vm2, %v703_v9 }
 0x12d   : > { %1193 = vmatmul.msk.f32.vlgmr.msra.gmra.mxu1 %vm704_vm2, %v699_v8 }
 0x1aa   : > { %v726_v10 = vpop.f32.mrf.mxu1 }
 0x1ab   : > { %v729_v11 = vsel %vm704_vm2, %v726_v10, -inf }
 0x1ac   : > { %730 = vmax.xlane.f32.xlu0 %v729_v11 }
 0x21f   : > { %v731_v12 = vpop.xlane.xlu0 %730 }
 0x220   : > { %v732_v13 = vsub.f32 %v726_v10, %v731_v12 }
 0x222   : > { %v733_v14 = vmul.f32 1.442695, %v732_v13 }
 0x224   : > { %1283 = vpow2.f32 %v733_v14 }
 0x22a   : > { %v1284_v15 = vpop.eup %1283 }
 0x22b   : > { %v735_v16 = vsel %vm704_vm2, %v1284_v15, 0.0 }
 0x22c   : > { %736 = vadd.xlane.f32.xlu1 %v735_v16 }
 0x245   : > { %753 = vrot.lane.b32.xlu1 %v699_v8, %s1400_s25 }
 0x29f   : > { %v737_v17 = vpop.xlane.xlu1 %736 }
 0x2a0   : > { %1285 = vrcp.f32 %v737_v17  ;;  %v749_v23 = vand.u32 2147483648, %v737_v17  ;;  %vm743_vm4 = vweird.f32 %v737_v17  ;;  %v747_v24 = vand.u32 2147483647, %v737_v17 }
 0x2a2   : > { %v750_v26 = vor.u32 1.1754944e-38, %v749_v23  ;;  %vm748_vm6 = vcmp.eq.f32.partialorder %v747_v24, 8.507059e+37 }
 0x2a6   : > { %v1286_v18 = vpop.eup %1285 }
 0x2a7   : > { %v739_v19 = vmul.f32 %v1286_v18, %v737_v17  ;;  %vm744_vm3 = vweird.f32 %v1286_v18 }
 0x2a8   : > { %vm745_vm5 = vmor %vm743_vm4, %vm744_vm3 }
 0x2a9   : > { %v740_v20 = vsub.f32 1.0, %v739_v19 }
 0x2ab   : > { %v741_v21 = vmul.f32 %v1286_v18, %v740_v20 }
 0x2ad   : > { %v742_v22 = vadd.f32 %v1286_v18, %v741_v21 }
 0x2af   : > { %v746_v25 = vsel %vm745_vm5, %v1286_v18, %v742_v22 }
 0x2b0   : > { %v751_v27 = vsel %vm748_vm6, %v750_v26, %v746_v25 }
 0x2b1   : > { %v752_v29 = vmul.f32 %v1284_v15, %v751_v27 }
 0x2b7   : > { %v754_v28 = vpop.permute.xlu1 %753 }
 0x2b8   : > { %774 = vmatpush.msra.mxu2 %v754_v28 }
 0x2b9   : > { %1194 = vmatmul.msk.f32.vlgmr.msra.gmra.mxu2 %vm704_vm2, %v752_v29 }
 0x33c   : > { %v776_v31 = vpop.f32.mrf.mxu2 }
 0x33d   : > { %1195 = vmatmul.msk.f32.vlgmr.msra.gmra.mxu3 %vm704_vm2, %v776_v31 }
 0x3c0   : > { %v801_v33 = vpop.f32.mrf.mxu3 }
 0x3c1   : > { %v804_v34 = vadd.f32 %v801_v33, %v779_v32 }
 0x3c3   : > { %805 = vst.msk [vmem:[#allocation2] sm:$0xff] %vm677_vm1, %v804_v34 }
 0x3c4 PF: > { %p1196_p2 = scmp.ne.s32.totalorder %s1380_s28, 3 }
 0x3c6   : > { %809 = sbr.rel (%p1196_p2) target bundleno = 1246 (0x4de), region = 84 }
 0x3cb   : > { %v810_v35 = vld [vmem:[%s1555_s30] sm:$0xff]  ;;  %vm820_vm7 = vcmask 261120   ;;  %v1401_v39 = vmov 0.0   ;;  %v1402_v42 = vmov 32.0  }
 0x3cc   : > { %v811_v36 = vld [vmem:[#allocation2] sm:$0xff]  ;;  %1290 = vrcp.f32 %v1402_v42 }
 0x3cd   : > { %v812_v37 = vadd.f32 %v811_v36, %v810_v35  ;;  %v1287_v38 = vld [vmem:[%s1727_s4] ss:$0 sm:$0xff]  ;;  %859 = vst.msk [vmem:[#allocation2] sm:$0xff] %vm820_vm7, %v1401_v39 }
 0x3ce   : > { %v1288_v63 = vld [vmem:[%s1728_s5] ss:$0 sm:$0xff] }
 0x3cf   : > { %v817_v40 = vadd.f32 %v1287_v38, %v812_v37  ;;  %v1289_v1 = vld [vmem:[%s1729_s6] ss:$0 sm:$0xff] }
 0x3d1   : > { %v821_v41 = vsel %vm820_vm7, %v817_v40, 0.0 }
 0x3d2   : > { %822 = vadd.xlane.f32.xlu0 %v821_v41  ;;  %v1291_v43 = vpop.eup %1290 }
 0x3d3   : > { %v825_v44 = vmul.f32 32.0, %v1291_v43  ;;  %vm829_vm8 = vweird.f32 %v1291_v43 }
 0x3d5   : > { %v826_v45 = vsub.f32 1.0, %v825_v44 }
 0x3d7   : > { %v827_v46 = vmul.f32 %v1291_v43, %v826_v45 }
 0x3d9   : > { %v828_v47 = vadd.f32 %v1291_v43, %v827_v46 }
 0x3db   : > { %v830_v48 = vsel %vm829_vm8, %v1291_v43, %v828_v47 }
 0x445   : > { %v823_v49 = vpop.xlane.xlu0 %822 }
 0x446   : > { %v831_v50 = vmul.f32 %v830_v48, %v823_v49 }
 0x448   : > { %v832_v51 = vsub.f32 %v817_v40, %v831_v50 }
 0x44a   : > { %v833_v52 = vmul.f32 %v832_v51, %v832_v51 }
 0x44c   : > { %v834_v53 = vsel %vm820_vm7, %v833_v52, 0.0 }
 0x44d   : > { %835 = vadd.xlane.f32.xlu0 %v834_v53 }
 0x4c0   : > { %v836_v54 = vpop.xlane.xlu0 %835 }
 0x4c1   : > { %v837_v55 = vmul.f32 %v836_v54, %v830_v48 }
 0x4c3   : > { %v838_v56 = vadd.f32 1e-05, %v837_v55 }
 0x4c5   : > { %1292 = vrsqrt.f32 %v838_v56  ;;  %vm845_vm10 = vweird.f32 %v838_v56 }
 0x4cb   : > { %v1293_v57 = vpop.eup %1292 }
 0x4cc   : > { %v840_v58 = vmul.f32 %v1293_v57, %v838_v56  ;;  %vm846_vm9 = vweird.f32 %v1293_v57 }
 0x4cd   : > { %vm847_vm11 = vmor %vm845_vm10, %vm846_vm9 }
 0x4ce   : > { %v841_v59 = vmul.f32 %v1293_v57, %v840_v58 }
 0x4d0   : > { %v842_v60 = vmul.f32 0.5, %v841_v59 }
 0x4d2   : > { %v843_v61 = vsub.f32 1.5, %v842_v60 }
 0x4d4   : > { %v844_v62 = vmul.f32 %v1293_v57, %v843_v61 }
 0x4d6   : > { %v848_v0 = vsel %vm847_vm11, %v1293_v57, %v844_v62 }
 0x4d7   : > { %v849_v2 = vmul.f32 %v848_v0, %v832_v51 }
 0x4d9   : > { %v853_v3 = vmul.f32 %v1288_v63, %v849_v2 }
 0x4db   : > { %v857_v4 = vadd.f32 %v1289_v1, %v853_v3 }
 0x4dd   : > { %858 = vst.msk [vmem:[#allocation3] sm:$0xff] %vm820_vm7, %v857_v4 }
 0x4de PF: > { %p1197_p4 = scmp.lt.s32.totalorder %s1380_s28, 4 }
 0x4e0   : > { %863 = sbr.rel (%p1197_p4) target bundleno = 1520 (0x5f0), region = 88 }
 0x4e5   : > { %v868_v5 = vld [vmem:[%s1730_s7 + $0x18] sm:$0xff]  ;;  %v867_v6 = vld [vmem:[%s1730_s7 + $0x10] sm:$0xff]  ;;  %v866_v8 = vld [vmem:[%s1730_s7 + $0x8] sm:$0xff]  ;;  %vm873_vm12 = vcmask 261120  }
 0x4e6   : > { %889 = vmatpush.msra.mxu0 %v868_v5  ;;  %v914_v7 = vld [vmem:[%s1732_s9 + $0x78] sm:$0xff]  ;;  %v913_v9 = vld [vmem:[%s1732_s9 + $0x70] sm:$0xff]  ;;  %v912_v10 = vld [vmem:[%s1732_s9 + $0x68] sm:$0xff] }
 0x4e7   : > { %915 = vmatpush.msra.mxu1 %v914_v7  ;;  %v865_v11 = vld [vmem:[%s1730_s7] sm:$0xff]  ;;  %v864_v12 = vld [vmem:[#allocation3] sm:$0xff]  ;;  %v910_v14 = vld [vmem:[%s1732_s9 + $0x58] sm:$0xff] }
 0x4e8   : > { %890 = vmatpush.msra.mxu0 %v867_v6  ;;  %v911_v13 = vld [vmem:[%s1732_s9 + $0x60] sm:$0xff]  ;;  %v909_v15 = vld [vmem:[%s1732_s9 + $0x50] sm:$0xff]  ;;  %v908_v16 = vld [vmem:[%s1732_s9 + $0x48] sm:$0xff] }
 0x4e9   : > { %916 = vmatpush.msra.mxu1 %v913_v9  ;;  %v907_v17 = vld [vmem:[%s1732_s9 + $0x40] sm:$0xff]  ;;  %v906_v18 = vld [vmem:[%s1732_s9 + $0x38] sm:$0xff]  ;;  %v905_v19 = vld [vmem:[%s1732_s9 + $0x30] sm:$0xff] }
 0x4ea   : > { %891 = vmatpush.msra.mxu0 %v866_v8  ;;  %v904_v20 = vld [vmem:[%s1732_s9 + $0x28] sm:$0xff]  ;;  %v903_v21 = vld [vmem:[%s1732_s9 + $0x20] sm:$0xff]  ;;  %v902_v22 = vld [vmem:[%s1732_s9 + $0x18] sm:$0xff] }
 0x4eb   : > { %917 = vmatpush.msra.mxu1 %v912_v10  ;;  %v901_v23 = vld [vmem:[%s1732_s9 + $0x10] sm:$0xff]  ;;  %v900_v24 = vld [vmem:[%s1732_s9 + $0x8] sm:$0xff]  ;;  %v899_v25 = vld [vmem:[%s1732_s9] sm:$0xff] }
 0x4ec   : > { %892 = vmatpush.msra.mxu0 %v865_v11  ;;  %v1294_v26 = vld [vmem:[%s1731_s8] ss:$0 sm:$0xff] }
 0x4ed   : > { %1198 = vmatmul.msk.f32.vlgmr.msra.gmra.mxu0 %vm873_vm12, %v864_v12  ;;  %918 = vmatpush.msra.mxu1 %v911_v13  ;;  %v898_v30 = vld [vmem:[#allocation2] sm:$0xff] }
 0x4ef   : > { %919 = vmatpush.msra.mxu1 %v910_v14 }
 0x4f1   : > { %920 = vmatpush.msra.mxu1 %v909_v15 }
 0x4f3   : > { %921 = vmatpush.msra.mxu1 %v908_v16 }
 0x4f5   : > { %922 = vmatpush.msra.mxu1 %v907_v17 }
 0x4f7   : > { %923 = vmatpush.msra.mxu1 %v906_v18 }
 0x4f9   : > { %924 = vmatpush.msra.mxu1 %v905_v19 }
 0x4fb   : > { %925 = vmatpush.msra.mxu1 %v904_v20 }
 0x4fd   : > { %926 = vmatpush.msra.mxu1 %v903_v21 }
 0x4ff   : > { %927 = vmatpush.msra.mxu1 %v902_v22 }
 0x501   : > { %928 = vmatpush.msra.mxu1 %v901_v23 }
 0x503   : > { %929 = vmatpush.msra.mxu1 %v900_v24 }
 0x505   : > { %930 = vmatpush.msra.mxu1 %v899_v25 }
 0x56a   : > { %v894_v27 = vpop.f32.mrf.mxu0 }
 0x56b   : > { %v895_v28 = vadd.f32 %v1294_v26, %v894_v27 }
 0x56d   : > { %v897_v29 = vmax.f32 %v895_v28, 0.0 }
 0x56f   : > { %931 = vmatmul.f32.vlgmr.msra.gmra.mxu1 %v897_v29 }
 0x5ec   : > { %v932_v31 = vpop.f32.mrf.mxu1 }
 0x5ed   : > { %v935_v32 = vadd.f32 %v932_v31, %v898_v30 }
 0x5ef   : > { %936 = vst.msk [vmem:[#allocation2] sm:$0xff] %vm873_vm12, %v935_v32 }
 0x5f0 PF: > { %p1199_p5 = scmp.ne.s32.totalorder %s1380_s28, 4 }
 0x5f1   : > { %s1767_s15 = sld [smem:[#allocation19_spill]] (!%p1199_p5) }
 0x5f2   : > { %940 = sbr.rel (%p1199_p5) target bundleno = 1801 (0x709), region = 92 }
 0x5f7   : > { %v941_v33 = vld [vmem:[#allocation3] sm:$0xff]  ;;  %v942_v34 = vld [vmem:[#allocation2] sm:$0xff]  ;;  %vm951_vm13 = vcmask 261120   ;;  %v1403_v39 = vmov 32.0  }
 0x5f8   : > { %v943_v35 = vadd.f32 %v942_v34, %v941_v33  ;;  %v1295_v36 = vld [vmem:[%s1733_s10] ss:$0 sm:$0xff]  ;;  %1298 = vrcp.f32 %v1403_v39 }
 0x5f9   : > { %v1296_v60 = vld [vmem:[%s1734_s11] ss:$0 sm:$0xff] }
 0x5fa   : > { %v948_v37 = vadd.f32 %v1295_v36, %v943_v35  ;;  %v1297_v62 = vld [vmem:[%s1767_s15] ss:$0 sm:$0xff] }
 0x5fc   : > { %v952_v38 = vsel %vm951_vm13, %v948_v37, 0.0 }
 0x5fd   : > { %953 = vadd.xlane.f32.xlu0 %v952_v38 }
 0x5fe   : > { %v1299_v40 = vpop.eup %1298 }
 0x5ff   : > { %v956_v41 = vmul.f32 32.0, %v1299_v40  ;;  %vm960_vm14 = vweird.f32 %v1299_v40 }
 0x601   : > { %v957_v42 = vsub.f32 1.0, %v956_v41 }
 0x603   : > { %v958_v43 = vmul.f32 %v1299_v40, %v957_v42 }
 0x605   : > { %v959_v44 = vadd.f32 %v1299_v40, %v958_v43 }
 0x607   : > { %v961_v45 = vsel %vm960_vm14, %v1299_v40, %v959_v44 }
 0x670   : > { %v954_v46 = vpop.xlane.xlu0 %953 }
 0x671   : > { %v962_v47 = vmul.f32 %v961_v45, %v954_v46 }
 0x673   : > { %v963_v48 = vsub.f32 %v948_v37, %v962_v47 }
 0x675   : > { %v964_v49 = vmul.f32 %v963_v48, %v963_v48 }
 0x677   : > { %v965_v50 = vsel %vm951_vm13, %v964_v49, 0.0 }
 0x678   : > { %966 = vadd.xlane.f32.xlu0 %v965_v50 }
 0x6eb   : > { %v967_v51 = vpop.xlane.xlu0 %966 }
 0x6ec   : > { %v968_v52 = vmul.f32 %v967_v51, %v961_v45 }
 0x6ee   : > { %v969_v53 = vadd.f32 1e-05, %v968_v52 }
 0x6f0   : > { %1300 = vrsqrt.f32 %v969_v53  ;;  %vm976_vm0 = vweird.f32 %v969_v53 }
 0x6f6   : > { %v1301_v54 = vpop.eup %1300 }
 0x6f7   : > { %v971_v55 = vmul.f32 %v1301_v54, %v969_v53  ;;  %vm977_vm15 = vweird.f32 %v1301_v54 }
 0x6f8   : > { %vm978_vm1 = vmor %vm976_vm0, %vm977_vm15 }
 0x6f9   : > { %v972_v56 = vmul.f32 %v1301_v54, %v971_v55 }
 0x6fb   : > { %v973_v57 = vmul.f32 0.5, %v972_v56 }
 0x6fd   : > { %v974_v58 = vsub.f32 1.5, %v973_v57 }
 0x6ff   : > { %v975_v59 = vmul.f32 %v1301_v54, %v974_v58 }
 0x701   : > { %v979_v61 = vsel %vm978_vm1, %v1301_v54, %v975_v59 }
 0x702   : > { %v980_v63 = vmul.f32 %v979_v61, %v963_v48 }
 0x704   : > { %v984_v0 = vmul.f32 %v1296_v60, %v980_v63 }
 0x706   : > { %v988_v1 = vadd.f32 %v1297_v62, %v984_v0 }
 0x708   : > { %989 = vst.msk [vmem:[%s598_s12] sm:$0xff] %vm951_vm13, %v988_v1 }
 0x709 PF: > { %s1768_s19 = sld [smem:[#allocation10_spill]]  ;;  %s1003_s13 = sshll.u32 %s598_s12, 4  ;;  %s1004_s13 = int_to_ptr.vmem [resolvable:$true] %s1003_s13 }
 0x70a   : > { %s1769_s20 = sld [smem:[#allocation8_spill]] }
 0x70b   : > { %s1771_s23 = sld [smem:[#allocation20_spill]] }
 0x70f   : > { %s1201_s24 = sshll.u32 %s1768_s19, 3 }
 0x710   : > { %s1772_s26 = sand.u32 1, %s1769_s20  }
 0x711   : > { %s1001_s18 = scalar_lea.hbm %s1771_s23, %s1201_s24  ;;  %s991_s27 = scalar_lea.sflag [#allocation5], %s1772_s26 }
 0x712   : > { %s1005_s25 = sshll.u32 %s1001_s18, 4  ;;  %s1322_s15 = scalar_lea.hbm %s1771_s23, 16  ;;  %s1006_s25 = int_to_ptr.hbm [resolvable:$true] %s1005_s25 }
 0x713   : > { %s1316_s28 = sshra.s32 %s1006_s25, 4  ;;  %s1317_s28 = int_to_ptr.hbm [resolvable:$true] %s1316_s28 }
 0x714   : > { %s1318_s29 = scalar_lea.hbm %s1317_s28, 8  ;;  %p1323_p10 = scmp.lt.s32.totalorder %s1317_s28, %s1771_s23 }
 0x715   : > { %p1319_p6 = scmp.ne.s32.totalorder %s1317_s28, %s1318_s29  ;;  %p1324_p11 = scmp.lt.s32.totalorder %s1322_s15, %s1318_s29 }
 0x717   : > { %p1320_p7 = pnand %p1319_p6, %p1523_p3  ;;  %p1325_p12 = por %p1324_p11, %p1323_p10 }
 0x719   : > { %p1321_p8 = pneg %p1320_p7 }
 0x71b   : > { %p1326_p13 = pnand %p1325_p12, %p1321_p8 }
 0x71d   : > { %1329 = shalt.err (!%p1326_p13)
}
 0x71e   : > { %1205 = dma.vmem_to_hbm [thread:$0]  (%p1523_p3), %s1004_s13, 128, %s1006_s25, %s991_s27  }
 0x71f PF: > { %s1773_s12 = sld [smem:[#allocation13_spill]] }
 0x720   : > { %s1774_s17 = sld [smem:[#allocation7_spill]] }
 0x725   : > { %p1211_p0 = scmp.ge.s32.totalorder %s1773_s12, 2 }
 0x726   : > { %s1017_s16 = sand.u32 1, %s1774_s17  }
 0x727   : > { %p1208_p1 = pnand %p1211_p0, %p1533_p9  ;;  %s1018_s22 = scalar_lea.sflag [#allocation5], %s1017_s16 }
 0x729   : > { %p1209_p2 = pneg %p1208_p1 }
 0x72b   : > { %1363 = dma.done.wait (%p1209_p2), %s1018_s22, 128  }
 0x72c   : > { %1365 = vsyncadd (%p1209_p2), %s1018_s22, 4294967168  ;;  %s26_s15 = sadd.s32 1, %s1773_s12   ;;  %s1776_s25 = sld [smem:[#allocation8_spill]] }
 0x72d   : > { %p23_p4 = scmp.ge.s32.totalorder %s26_s15, 12   ;;  %s1777_s26 = sld [smem:[#allocation9_spill]] }
 0x72e   : > { %s1778_s27 = sld [smem:[#allocation18_spill]] }
 0x72f   : > { %s1779_s28 = sld [smem:[#allocation11_spill]]  ;;  %25 = sbr.rel (!%p23_p4) target bundleno = 8 (0x8), region = 145 }
 0x730   : > { %s1780_s29 = sld [smem:[#allocation12_spill]] }
 0x731   : > { %s1781_s30 = sld [smem:[#allocation14_spill]] }
 0x732   : > { %s1782_s14 = sld [smem:[#allocation16_spill]] }
 0x734   :  { %1024 = vsyncpa [#allocation5], 1 }
 0x735   :  { %1026 = vsyncpa [#allocation5 + $0x1], 1 }

</bundles_post_ra>
